<compile_context>
chip_gen: v7x
topology: tpu7x:2x2x1
jax: 0.10.0
libtpu: 0.0.40
codegen_flags: <defaults>
</compile_context>

<pallas_src>
import functools

import jax
import jax.numpy as jnp
from jax.experimental import pallas as pl
from jax.experimental.pallas import tpu as pltpu

HIDDEN = 128     # hidden width of the fc layer (fixed by the PyTorch module)
LANE = 128       # TPU lane width
SUBLANE = 8      # f32 sublane width


def _round_up(x, m):
    return (x + m - 1) // m * m


def actor_critic_kernel(x_ref, wfc_ref, bfc_ref, wh_ref, bh_ref,
                        actor_ref, critic_ref, *, output_dim):
    """One batch tile: h = relu(x @ Wfc + bfc); fused = h @ [Wa|Wc|0] + [ba|bc|0]."""
    # h = relu(x @ W_fc + b_fc)   -> [tile_b, 128]   (K = input_dim, unpadded)
    h = jnp.dot(x_ref[...], wfc_ref[...], preferred_element_type=jnp.float32)
    h = jnp.maximum(h + bfc_ref[...], 0.0)

    # single 128-wide MXU pass over the fused (actor | critic | pad) head
    fused = jnp.dot(h, wh_ref[...], preferred_element_type=jnp.float32) + bh_ref[...]

    # narrow (masked) stores straight into the two real outputs
    actor_ref[...] = fused[:, :output_dim].astype(actor_ref.dtype)
    critic_ref[...] = fused[:, output_dim:output_dim + 1].astype(critic_ref.dtype)


def prepare_params(params):
    """One-time weight fusion (run once, not per forward call).

    Returns wfc [in,128], bfc [1,128], and the fused lane-padded head
    wh [128, 128] / bh [1, 128] with actor columns first, then the critic column.
    """
    output_dim = params["wa"].shape[1]
    n_pad = _round_up(output_dim + 1, LANE)

    wh = jnp.zeros((HIDDEN, n_pad), jnp.float32)
    wh = wh.at[:, :output_dim].set(params["wa"])
    wh = wh.at[:, output_dim:output_dim + 1].set(params["wc"])

    bh = jnp.zeros((1, n_pad), jnp.float32)
    bh = bh.at[:, :output_dim].set(params["ba"])
    bh = bh.at[:, output_dim:output_dim + 1].set(params["bc"])

    return {
        "wfc": params["wfc"].astype(jnp.float32),
        "bfc": params["bfc"].astype(jnp.float32),
        "wh": wh,
        "bh": bh,
        "output_dim": output_dim,
    }


def _vmem_cap_bytes():
    # v7x has 64 MiB VMEM per TensorCore; v5e/v6e have 128 MiB. Leave headroom.
    try:
        return int(pltpu.get_tpu_info().vmem_capacity_bytes * 3 // 4)
    except Exception:
        return 48 << 20


def actor_critic_forward(x, fused_params, *, tile_b=1024):
    """x: [B, input_dim] f32. fused_params: output of prepare_params()."""
    B, input_dim = x.shape
    output_dim = int(fused_params["output_dim"])
    wfc, bfc = fused_params["wfc"], fused_params["bfc"]
    wh, bh = fused_params["wh"], fused_params["bh"]
    n_pad = wh.shape[1]

    # Batch tile: sublane-aligned; small enough that the grid has >=2 steps
    # whenever B allows it (so v7x's two TensorCores both get work).
    tile_b = min(tile_b, _round_up(pl.cdiv(B, 2), SUBLANE))
    tile_b = max(tile_b, SUBLANE)
    grid = (pl.cdiv(B, tile_b),)

    # VMEM budget: double-buffered x + both output tiles, resident weights, headroom.
    tile_bytes = 4 * tile_b * (input_dim + output_dim + 1)
    weight_bytes = 4 * (input_dim * HIDDEN + HIDDEN + HIDDEN * n_pad + n_pad)
    want = 2 * tile_bytes + weight_bytes + (8 << 20)
    vmem_limit = int(min(max(want, 16 << 20), _vmem_cap_bytes()))

    flops = 2 * B * (input_dim * HIDDEN + HIDDEN * n_pad)
    bytes_accessed = 4 * B * (input_dim + output_dim + 1) + weight_bytes

    kernel = functools.partial(actor_critic_kernel, output_dim=output_dim)

    actor, critic = pl.pallas_call(
        kernel,
        out_shape=(
            jax.ShapeDtypeStruct((B, output_dim), x.dtype),
            jax.ShapeDtypeStruct((B, 1), x.dtype),
        ),
        grid=grid,
        in_specs=[
            pl.BlockSpec((tile_b, input_dim), lambda i: (i, 0)),   # x tile (pipelined)
            pl.BlockSpec((input_dim, HIDDEN), lambda i: (0, 0)),   # W_fc (resident)
            pl.BlockSpec((1, HIDDEN), lambda i: (0, 0)),           # b_fc (resident)
            pl.BlockSpec((HIDDEN, n_pad), lambda i: (0, 0)),       # fused head W (resident)
            pl.BlockSpec((1, n_pad), lambda i: (0, 0)),            # fused head b (resident)
        ],
        out_specs=(
            pl.BlockSpec((tile_b, output_dim), lambda i: (i, 0)),  # actor logits
            pl.BlockSpec((tile_b, 1), lambda i: (i, 0)),           # critic value
        ),
        compiler_params=pltpu.CompilerParams(
            dimension_semantics=("parallel",),
            vmem_limit_bytes=vmem_limit,
        ),
        cost_estimate=pl.CostEstimate(
            flops=flops, transcendentals=0, bytes_accessed=bytes_accessed),
    )(x, wfc, bfc, wh, bh)

    return actor, critic


def init_params(key, input_dim, output_dim, hidden=HIDDEN):
    """Deterministic PyTorch-Linear-style init (uniform +-1/sqrt(fan_in))."""
    ks = jax.random.split(key, 6)

    def linear(kw, kb, fan_in, fan_out):
        bound = 1.0 / jnp.sqrt(fan_in)
        # store weight as [in, out] (pre-transposed from torch's [out, in])
        w = jax.random.uniform(kw, (fan_in, fan_out), jnp.float32, -bound, bound)
        b = jax.random.uniform(kb, (1, fan_out), jnp.float32, -bound, bound)
        return w, b

    wfc, bfc = linear(ks[0], ks[1], input_dim, hidden)
    wa, ba = linear(ks[2], ks[3], hidden, output_dim)
    wc, bc = linear(ks[4], ks[5], hidden, 1)
    return {"wfc": wfc, "bfc": bfc, "wa": wa, "ba": ba, "wc": wc, "bc": bc}


def reference_forward(x, p):
    h = jnp.maximum(x @ p["wfc"] + p["bfc"], 0.0)
    return h @ p["wa"] + p["ba"], h @ p["wc"] + p["bc"]


if __name__ == "__main__":
    input_dim = 32
    output_dim = 8

    key = jax.random.PRNGKey(0)
    kx, kx2, kp = jax.random.split(key, 3)

    params = init_params(kp, input_dim, output_dim)
    fused_params = prepare_params(params)      # one-time weight fusion

    # Case 1: small batch (single grid step).
    batch = 8
    x = jax.random.normal(kx, (batch, input_dim), jnp.float32)
    actor_out, critic_out = actor_critic_forward(x, fused_params)
    actor_out = jax.block_until_ready(actor_out)
    critic_out = jax.block_until_ready(critic_out)

    ref_actor, ref_critic = reference_forward(x, params)
    assert actor_out.shape == (batch, output_dim)
    assert critic_out.shape == (batch, 1)
    assert jnp.allclose(actor_out, ref_actor, atol=1e-5, rtol=1e-5)
    assert jnp.allclose(critic_out, ref_critic, atol=1e-5, rtol=1e-5)

    # Case 2: batch not a multiple of the tile -> exercises the masked tail tile.
    batch2 = 20
    x2 = jax.random.normal(kx2, (batch2, input_dim), jnp.float32)
    a2, c2 = actor_critic_forward(x2, fused_params)
    a2 = jax.block_until_ready(a2)
    c2 = jax.block_until_ready(c2)
    ra2, rc2 = reference_forward(x2, params)
    assert a2.shape == (batch2, output_dim) and c2.shape == (batch2, 1)
    assert jnp.allclose(a2, ra2, atol=1e-5, rtol=1e-5)
    assert jnp.allclose(c2, rc2, atol=1e-5, rtol=1e-5)

    print("KERNEL_OK")
</pallas_src>

<mosaic_0001>
module attributes {stable_mosaic.version = 11 : i64} {
  func.func @actor_critic_kernel(%arg0: i32, %arg1: memref<8x32xf32, #tpu.memory_space<vmem>>, %arg2: memref<32x128xf32, #tpu.memory_space<vmem>>, %arg3: memref<1x128xf32, #tpu.memory_space<vmem>>, %arg4: memref<128x128xf32, #tpu.memory_space<vmem>>, %arg5: memref<1x128xf32, #tpu.memory_space<vmem>>, %arg6: memref<8x8xf32, #tpu.memory_space<vmem>>, %arg7: memref<8x1xf32, #tpu.memory_space<vmem>>) attributes {dimension_semantics = [#tpu.dimension_semantics<parallel>], iteration_bounds = array<i64: 1>, scalar_prefetch = 0 : i64, scratch_operands = 0 : i64, tpu.core_type = #tpu.core_type<tc>, window_params = [{transform_indices = @transform_0, window_bounds = array<i64: 8, 32>}, {pipeline_mode = #tpu.pipeline_mode<synchronous>, transform_indices = @transform_1, window_bounds = array<i64: 32, 128>}, {pipeline_mode = #tpu.pipeline_mode<synchronous>, transform_indices = @transform_2, window_bounds = array<i64: 1, 128>}, {pipeline_mode = #tpu.pipeline_mode<synchronous>, transform_indices = @transform_3, window_bounds = array<i64: 128, 128>}, {pipeline_mode = #tpu.pipeline_mode<synchronous>, transform_indices = @transform_4, window_bounds = array<i64: 1, 128>}, {transform_indices = @transform_5, window_bounds = array<i64: 8, 8>}, {transform_indices = @transform_6, window_bounds = array<i64: 8, 1>}]} {
    %c0 = arith.constant 0 : index
    %c0_0 = arith.constant 0 : index
    %0 = vector.load %arg1[%c0, %c0_0] : memref<8x32xf32, #tpu.memory_space<vmem>>, vector<8x32xf32>
    %c0_1 = arith.constant 0 : index
    %c0_2 = arith.constant 0 : index
    %1 = vector.load %arg2[%c0_1, %c0_2] : memref<32x128xf32, #tpu.memory_space<vmem>>, vector<32x128xf32>
    %cst = arith.constant dense<0.000000e+00> : vector<8x128xf32>
    %2 = tpu.matmul %0, %1, %cst {dimension_numbers = #tpu.dot_dimension_numbers<[1], [0], [0], [1], [0, 0, 1, 1], [], []>} : vector<8x32xf32>, vector<32x128xf32>, vector<8x128xf32> -> vector<8x128xf32>
    %c0_3 = arith.constant 0 : index
    %c0_4 = arith.constant 0 : index
    %3 = vector.load %arg3[%c0_3, %c0_4] : memref<1x128xf32, #tpu.memory_space<vmem>>, vector<1x128xf32>
    %4 = vector.broadcast %3 : vector<1x128xf32> to vector<8x128xf32>
    %5 = arith.addf %2, %4 : vector<8x128xf32>
    %cst_5 = arith.constant 0.000000e+00 : f32
    %6 = vector.broadcast %cst_5 : f32 to vector<8x128xf32>
    %7 = arith.maximumf %5, %6 : vector<8x128xf32>
    %c0_6 = arith.constant 0 : index
    %c0_7 = arith.constant 0 : index
    %8 = vector.load %arg4[%c0_6, %c0_7] : memref<128x128xf32, #tpu.memory_space<vmem>>, vector<128x128xf32>
    %cst_8 = arith.constant dense<0.000000e+00> : vector<8x128xf32>
    %9 = tpu.matmul %7, %8, %cst_8 {dimension_numbers = #tpu.dot_dimension_numbers<[1], [0], [0], [1], [0, 0, 1, 1], [], []>} : vector<8x128xf32>, vector<128x128xf32>, vector<8x128xf32> -> vector<8x128xf32>
    %c0_9 = arith.constant 0 : index
    %c0_10 = arith.constant 0 : index
    %10 = vector.load %arg5[%c0_9, %c0_10] : memref<1x128xf32, #tpu.memory_space<vmem>>, vector<1x128xf32>
    %11 = vector.broadcast %10 : vector<1x128xf32> to vector<8x128xf32>
    %12 = arith.addf %9, %11 : vector<8x128xf32>
    %13 = vector.extract_strided_slice %12 {offsets = [0, 0], sizes = [8, 8], strides = [1, 1]} : vector<8x128xf32> to vector<8x8xf32>
    %c0_11 = arith.constant 0 : index
    %c0_12 = arith.constant 0 : index
    %14 = vector.load %arg6[%c0_11, %c0_12] : memref<8x8xf32, #tpu.memory_space<vmem>>, vector<8x8xf32>
    tpu.vector_store %arg6[%c0_11, %c0_12], %13 {strides = array<i32>} : memref<8x8xf32, #tpu.memory_space<vmem>>, vector<8x8xf32>,
    %15 = vector.extract_strided_slice %12 {offsets = [0, 8], sizes = [8, 1], strides = [1, 1]} : vector<8x128xf32> to vector<8x1xf32>
    %c0_13 = arith.constant 0 : index
    %c0_14 = arith.constant 0 : index
    %16 = vector.load %arg7[%c0_13, %c0_14] : memref<8x1xf32, #tpu.memory_space<vmem>>, vector<8x1xf32>
    tpu.vector_store %arg7[%c0_13, %c0_14], %15 {strides = array<i32>} : memref<8x1xf32, #tpu.memory_space<vmem>>, vector<8x1xf32>,
    return
  }
  func.func @transform_0(%arg0: i32) -> (i32, i32) {
    %c0_i32 = arith.constant 0 : i32
    %c0_i32_0 = arith.constant 0 : i32
    return %arg0, %c0_i32 : i32, i32
  }
  func.func @transform_1(%arg0: i32) -> (i32, i32) {
    %c0_i32 = arith.constant 0 : i32
    %c0_i32_0 = arith.constant 0 : i32
    %c0_i32_1 = arith.constant 0 : i32
    return %c0_i32, %c0_i32_0 : i32, i32
  }
  func.func @transform_2(%arg0: i32) -> (i32, i32) {
    %c0_i32 = arith.constant 0 : i32
    %c0_i32_0 = arith.constant 0 : i32
    %c0_i32_1 = arith.constant 0 : i32
    return %c0_i32, %c0_i32_0 : i32, i32
  }
  func.func @transform_3(%arg0: i32) -> (i32, i32) {
    %c0_i32 = arith.constant 0 : i32
    %c0_i32_0 = arith.constant 0 : i32
    %c0_i32_1 = arith.constant 0 : i32
    return %c0_i32, %c0_i32_0 : i32, i32
  }
  func.func @transform_4(%arg0: i32) -> (i32, i32) {
    %c0_i32 = arith.constant 0 : i32
    %c0_i32_0 = arith.constant 0 : i32
    %c0_i32_1 = arith.constant 0 : i32
    return %c0_i32, %c0_i32_0 : i32, i32
  }
  func.func @transform_5(%arg0: i32) -> (i32, i32) {
    %c0_i32 = arith.constant 0 : i32
    %c0_i32_0 = arith.constant 0 : i32
    return %arg0, %c0_i32 : i32, i32
  }
  func.func @transform_6(%arg0: i32) -> (i32, i32) {
    %c0_i32 = arith.constant 0 : i32
    %c0_i32_0 = arith.constant 0 : i32
    return %arg0, %c0_i32 : i32, i32
  }
}

</mosaic_0001>

<bundles_post_ra>
// kernel: tpu_custom_call.1
= control target key start
LH: loop header
LB: loop body
LE: loop exit
PB: predicated region body
PF: predicated region fallthrough
CT: control target
= control target key end

     0   :  { %12 = vsyncpa [#allocation3], 0  ;;  %s583_s0 = inlined_call_operand.hbm [shape: f32[8,32], index: 0, kind: input, shape index: {}]   ;;  %s584_s1 = inlined_call_operand.hbm [shape: f32[32,128], index: 1, kind: input, shape index: {}]   ;;  %s585_s2 = inlined_call_operand.vmem [shape: f32[1,128], index: 2, kind: input, shape index: {}]   ;;  %s586_s3 = inlined_call_operand.hbm [shape: f32[128,128], index: 3, kind: input, shape index: {}]   ;;  %s587_s4 = inlined_call_operand.vmem [shape: f32[1,128], index: 4, kind: input, shape index: {}]   ;;  %s588_s5 = inlined_call_operand.hbm [shape: f32[8,8], index: 5, kind: output, shape index: {0}]   ;;  %s589_s6 = inlined_call_operand.vmem [shape: f32[8,1], index: 6, kind: output, shape index: {1}]  }
   0x1   :  { %13 = vsyncpa [#allocation6], 0 }
   0x2   :  { %14 = vsyncpa [#allocation4], 0  ;;  %s475_s21 = smov [#allocation5]   ;;  %s381_s25 = scalar_lea.hbm %s584_s1, 512 }
   0x3   :  { %s30_s22 = sshll.u32 %s475_s21, 4  ;;  %p382_p0 = scmp.ne.s32.totalorder %s584_s1, %s381_s25  ;;  %s31_s22 = int_to_ptr.vmem [resolvable:$true] %s30_s22 }
   0x4   :  { %p385_p1 = scmp.lt.u32.totalorder %s381_s25, %s584_s1 }
   0x6   :  { %p387_p2 = pnand %p385_p1, %p382_p0 }
   0x8   :  { %390 = shalt.err (!%p387_p2)
}
   0x9   :  { %s391_s30 = scalar_lea.vmem %s31_s22, 512  ;;  %p396_p4 = scmp.lt.s32.totalorder %s31_s22, %s31_s22 }
   0xa   :  { %p392_p3 = scmp.ne.s32.totalorder %s31_s22, %s391_s30  ;;  %p397_p5 = scmp.lt.s32.totalorder %s391_s30, %s391_s30 }
   0xc   :  { %p398_p6 = por %p397_p5, %p396_p4 }
   0xe   :  { %p399_p7 = pnand %p398_p6, %p392_p3 }
  0x10   :  { %402 = shalt.err (!%p399_p7)
}
  0x11   :  { %s476_s7 = smov 128   ;;  %s477_s8 = smov 8  }
  0x12   :  { %36 = dma.hbm_to_vmem [thread:$0]  %s584_s1, 512, %s31_s22, [#allocation6], %s476_s7, %s476_s7, %s477_s8  }
  0x13   :  { %s478_s11 = smov [#allocation2]   ;;  %s479_s13 = smov [#allocation7]  }
  0x14   :  { %s21_s12 = sshll.u32 %s478_s11, 4  ;;  %s44_s14 = sshll.u32 %s479_s13, 4  ;;  %s22_s12 = int_to_ptr.vmem [resolvable:$true] %s21_s12  ;;  %s45_s14 = int_to_ptr.vmem [resolvable:$true] %s44_s14 }
  0x15   :  { %s403_s17 = scalar_lea.hbm %s583_s0, 128 }
  0x16   :  { %p404_p8 = scmp.ne.s32.totalorder %s583_s0, %s403_s17  ;;  %p407_p9 = scmp.lt.u32.totalorder %s403_s17, %s583_s0 }
  0x18   :  { %p409_p10 = pnand %p407_p9, %p404_p8 }
  0x1a   :  { %412 = shalt.err (!%p409_p10)
}
  0x1b   :  { %s413_s1 = scalar_lea.vmem %s22_s12, 128  ;;  %p418_p12 = scmp.lt.s32.totalorder %s22_s12, %s22_s12 }
  0x1c   :  { %p414_p11 = scmp.ne.s32.totalorder %s22_s12, %s413_s1  ;;  %p419_p13 = scmp.lt.s32.totalorder %s413_s1, %s413_s1 }
  0x1e   :  { %p420_p0 = por %p419_p13, %p418_p12 }
  0x20   :  { %p421_p1 = pnand %p420_p0, %p414_p11 }
  0x22   :  { %424 = shalt.err (!%p421_p1)
}
  0x23   :  { %24 = dma.hbm_to_vmem [thread:$0]  %s583_s0, 128, %s22_s12, [#allocation3]  }
  0x24   :  { %s425_s26 = scalar_lea.hbm %s586_s3, 2048 }
  0x25   :  { %p426_p2 = scmp.ne.s32.totalorder %s586_s3, %s425_s26  ;;  %p429_p3 = scmp.lt.u32.totalorder %s425_s26, %s586_s3 }
  0x27   :  { %p431_p4 = pnand %p429_p3, %p426_p2 }
  0x29   :  { %434 = shalt.err (!%p431_p4)
}
  0x2a   :  { %s435_s9 = scalar_lea.vmem %s45_s14, 2048  ;;  %p440_p6 = scmp.lt.s32.totalorder %s45_s14, %s45_s14 }
  0x2b   :  { %p436_p5 = scmp.ne.s32.totalorder %s45_s14, %s435_s9  ;;  %p441_p7 = scmp.lt.s32.totalorder %s435_s9, %s435_s9 }
  0x2d   :  { %p442_p8 = por %p441_p7, %p440_p6 }
  0x2f   :  { %p443_p9 = pnand %p442_p8, %p436_p5 }
  0x31   :  { %446 = shalt.err (!%p443_p9)
}
  0x32   :  { %50 = dma.hbm_to_vmem [thread:$0]  %s586_s3, 2048, %s45_s14, [#allocation6], %s476_s7, %s476_s7, %s477_s8  }
  0x33   :  { %469 = dma.done.wait [#allocation3], 128  }
  0x34   :  { %470 = vsyncadd [#allocation3], 4294967168 }
  0x35   :  { %471 = dma.done.wait [#allocation6], 2560  }
  0x36   :  { %472 = vsyncadd [#allocation6], 4294964736  ;;  %v480_v0 = vmov 0.0|0.0   ;;  %vm481_vm0 = vmmov 0   ;;  %v482_v1 = vmov 0.0   ;;  %v63_v2 = vld [vmem:[#allocation5] sm:$0xff] }
  0x37   :  { %341 = vmatprep.subr.bf16.mxu0 %v480_v0  ;;  %303 = vmatprep.mubr.msk.f32.mxu0 %vm481_vm0, %v482_v1  ;;  %v64_v3 = vld [vmem:[#allocation5 + $0x8] sm:$0xff]  ;;  %v65_v4 = vld [vmem:[#allocation5 + $0x10] sm:$0xff]  ;;  %v66_v6 = vld [vmem:[#allocation5 + $0x18] sm:$0xff]  ;;  %vm74_vm1 = vcmask 261120   ;;  %s483_s12 = smov [#allocation8]   ;;  %vm242_vm2 = vcmask 64512  }
  0x38   :  { %347 = vmatprep.subr.bf16.mxu1 %v480_v0  ;;  %338 = vmatprep.mubr.msk.f32.mxu1 %vm481_vm0, %v482_v1  ;;  %v342_v5 = vpack.c.bf16 %v64_v3, %v63_v2  ;;  %v149_v7 = vld [vmem:[#allocation7] sm:$0xff]  ;;  %v150_v8 = vld [vmem:[#allocation7 + $0x8] sm:$0xff]  ;;  %v151_v9 = vld [vmem:[#allocation7 + $0x10] sm:$0xff]  ;;  %v345_v11 = vpack.c.bf16 %v66_v6, %v65_v4  ;;  %s256_s13 = sshll.u32 %s483_s12, 4  ;;  %s484_s14 = smov 120   ;;  %s257_s13 = int_to_ptr.vmem [resolvable:$true] %s256_s13 }
  0x39   :  { %v152_v10 = vld [vmem:[#allocation7 + $0x18] sm:$0xff]  ;;  %v348_v12 = vpack.c.bf16 %v150_v8, %v149_v7  ;;  %v153_v14 = vld [vmem:[#allocation7 + $0x20] sm:$0xff]  ;;  %v154_v15 = vld [vmem:[#allocation7 + $0x28] sm:$0xff]  ;;  %p452_p11 = scmp.lt.s32.totalorder %s257_s13, %s257_s13 }
  0x3a   :  { %343 = vmatpush3.bf16.msra.mxu0 %v342_v5  ;;  %v351_v13 = vpack.c.bf16 %v152_v10, %v151_v9  ;;  %v62_v16 = vld [vmem:[#allocation2] sm:$0xff]  ;;  %v354_v17 = vpack.c.bf16 %v154_v15, %v153_v14  ;;  %v155_v18 = vld [vmem:[#allocation7 + $0x30] sm:$0xff]  ;;  %v157_v21 = vld [vmem:[#allocation7 + $0x40] sm:$0xff] }
  0x3b   :  { %344 = vmatprep.subr.bf16.mxu0 %v480_v0  ;;  %349 = vmatpush3.bf16.msra.mxu1 %v348_v12  ;;  %v156_v19 = vld [vmem:[#allocation7 + $0x38] sm:$0xff]  ;;  %v158_v22 = vld [vmem:[#allocation7 + $0x48] sm:$0xff]  ;;  %v159_v24 = vld [vmem:[#allocation7 + $0x50] sm:$0xff] }
  0x3c   :  { %350 = vmatprep.subr.bf16.mxu1 %v480_v0  ;;  %v357_v20 = vpack.c.bf16 %v156_v19, %v155_v18  ;;  %v360_v23 = vpack.c.bf16 %v158_v22, %v157_v21  ;;  %v160_v25 = vld [vmem:[#allocation7 + $0x58] sm:$0xff]  ;;  %v161_v27 = vld [vmem:[#allocation7 + $0x60] sm:$0xff]  ;;  %v162_v28 = vld [vmem:[#allocation7 + $0x68] sm:$0xff] }
  0x3d   :  { %v363_v26 = vpack.c.bf16 %v160_v25, %v159_v24  ;;  %v366_v29 = vpack.c.bf16 %v162_v28, %v161_v27  ;;  %v163_v30 = vld [vmem:[#allocation7 + $0x70] sm:$0xff]  ;;  %v164_v31 = vld [vmem:[#allocation7 + $0x78] sm:$0xff] }
  0x3e   :  { %346 = vmatpush3.bf16.msra.mxu0 %v345_v11  ;;  %v369_v32 = vpack.c.bf16 %v164_v31, %v163_v30  ;;  %v270_v33 = vld [vmem:[%s585_s2] ss:$0 sm:$0xff]  ;;  %s447_s2 = scalar_lea.vmem %s257_s13, 128 }
  0x3f   :  { %352 = vmatpush3.bf16.msra.mxu1 %v351_v13  ;;  %v272_v38 = vld [vmem:[%s587_s4] ss:$0 sm:$0xff]  ;;  %p448_p10 = scmp.ne.s32.totalorder %s257_s13, %s447_s2  ;;  %p453_p12 = scmp.lt.s32.totalorder %s447_s2, %s447_s2 }
  0x40   :  { %353 = vmatprep.subr.bf16.mxu1 %v480_v0 }
  0x41   :  { %304 = vmatmul.mubr.msk.f32.vlgmr.msra.gmra.mrb[0].mxu0 %vm74_vm1, %v62_v16  ;;  %p454_p13 = por %p453_p12, %p452_p11 }
  0x43   :  { %355 = vmatpush3.bf16.msra.mxu1 %v354_v17  ;;  %p455_p0 = pnand %p454_p13, %p448_p10 }
  0x44   :  { %356 = vmatprep.subr.bf16.mxu1 %v480_v0 }
  0x47   :  { %358 = vmatpush3.bf16.msra.mxu1 %v357_v20 }
  0x48   :  { %359 = vmatprep.subr.bf16.mxu1 %v480_v0 }
  0x4b   :  { %361 = vmatpush3.bf16.msra.mxu1 %v360_v23 }
  0x4c   :  { %362 = vmatprep.subr.bf16.mxu1 %v480_v0 }
  0x4f   :  { %364 = vmatpush3.bf16.msra.mxu1 %v363_v26 }
  0x50   :  { %365 = vmatprep.subr.bf16.mxu1 %v480_v0 }
  0x53   :  { %367 = vmatpush3.bf16.msra.mxu1 %v366_v29 }
  0x54   :  { %368 = vmatprep.subr.bf16.mxu1 %v480_v0 }
  0x57   :  { %370 = vmatpush3.bf16.msra.mxu1 %v369_v32 }
 0x114   :  { %v144_v34 = vpop.f32.mrb[0].mxu0 }
 0x115   :  { %v145_v35 = vadd.f32 %v270_v33, %v144_v34  ;;  %v305_v36 = vpop.f32.mrb[1].mxu0 }
 0x117   :  { %v148_v37 = vmax.f32 %v145_v35, 0.0 }
 0x119   :  { %339 = vmatmul.mubr.f32.vlgmr.msra.gmra.mrb[0].mxu1 %v148_v37 }
 0x1ec   :  { %v238_v39 = vpop.f32.mrb[0].mxu1 }
 0x1ed   :  { %v239_v40 = vadd.f32 %v272_v38, %v238_v39  ;;  %v340_v41 = vpop.f32.mrb[1].mxu1 }
 0x1ef   :  { %245 = vrot.lane.b32.xlu0 %v239_v40, %s484_s14  ;;  %243 = vst.msk [vmem:[#allocation8] sm:$0xff] %vm242_vm2, %v239_v40 }
 0x1f0   :  { %458 = shalt.err (!%p455_p0)
}
 0x1f1   :  { %s459_s4 = scalar_lea.hbm %s588_s5, 128 }
 0x1f2   :  { %p460_p1 = scmp.ne.s32.totalorder %s588_s5, %s459_s4  ;;  %p463_p2 = scmp.lt.u32.totalorder %s459_s4, %s588_s5 }
 0x1f4   :  { %p465_p3 = pnand %p463_p2, %p460_p1 }
 0x1f6   :  { %468 = shalt.err (!%p465_p3)
}
 0x1f7   :  { %259 = dma.vmem_to_hbm [thread:$0]  %s257_s13, 128, %s588_s5, [#allocation4]   ;;  %vm248_vm3 = vcmask 7168  }
 0x261   :  { %v246_v42 = vpop.permute.xlu0 %245 }
 0x262   :  { %249 = vst.msk [vmem:[%s589_s6] sm:$0xff] %vm248_vm3, %v246_v42 }
 0x263   :  { %473 = dma.done.wait [#allocation4], 128  }
 0x264   :  { %474 = vsyncadd [#allocation4], 4294967168 }
 0x265   :  { %267 = vsyncpa [#allocation3], 1 }
 0x266   :  { %268 = vsyncpa [#allocation6], 1 }
 0x267   :  { %269 = vsyncpa [#allocation4], 1 }

</bundles_post_ra>
